<compile_context>
chip_gen: v7x
topology: tpu7x:2x2x1
jax: 0.10.0
libtpu: 0.0.40
codegen_flags: <defaults>
</compile_context>

<pallas_src>
import functools

import jax
import jax.numpy as jnp
from jax.experimental import pallas as pl
from jax.experimental.pallas import tpu as pltpu

_NEG_LARGE = -1.0e30


# --------------------------------------------------------------------------- #
# Kernel 1: rowwise L2 normalization * sqrt(1/tau), emitted in the MXU dtype
# --------------------------------------------------------------------------- #
def _normalize_kernel(x_ref, o_ref, *, scale):
    """For one (1, T, D) tile:  x / max(||x||, 1e-12) * sqrt(1/tau), cast to out dtype.

    Padded (all-zero) rows stay exactly zero, which the loss kernel relies on.
    """
    x = x_ref[0].astype(jnp.float32)                       # (T, D)
    ss = jnp.sum(x * x, axis=-1, keepdims=True)            # (T, 1)
    inv = jax.lax.rsqrt(jnp.maximum(ss, 1e-24)) * scale    # == scale / max(||x||, 1e-12)
    o_ref[0] = (x * inv).astype(o_ref.dtype)


def _run_normalize(x_stack, tile, scale, out_dtype):
    g, npad, d = x_stack.shape
    kernel = functools.partial(_normalize_kernel, scale=scale)
    grid_spec = pltpu.PrefetchScalarGridSpec(
        num_scalar_prefetch=0,
        grid=(g, npad // tile),
        in_specs=[pl.BlockSpec((1, tile, d), lambda m, q: (m, q, 0))],
        out_specs=pl.BlockSpec((1, tile, d), lambda m, q: (m, q, 0)),
    )
    return pl.pallas_call(
        kernel,
        grid_spec=grid_spec,
        out_shape=jax.ShapeDtypeStruct((g, npad, d), out_dtype),
        compiler_params=pltpu.CompilerParams(
            dimension_semantics=("parallel", "parallel")),
    )(x_stack)


# --------------------------------------------------------------------------- #
# Kernel 2: tiled InfoNCE with online logsumexp (two temperature "heads")
# --------------------------------------------------------------------------- #
def _loss_kernel(idx_ref, scal_ref, a_ref, s_ref, sq_ref, out_ref,
                 m_sc, l1_sc, l2_sc, *, n_pad_cols):
    """One (q-tile, pair, k-tile) grid step.

    idx_ref  : SMEM (P, 2) int32 -- (anchor, sample) matrix index per pair (index_map only)
    scal_ref : SMEM (P, 2) f32   -- (tau1/tau2 ratio, weight of head 2)
    a_ref    : VMEM (1, Tq, D)   -- normalized*sqrt(1/tau) anchor rows  (q tile)
    s_ref    : VMEM (1, Tk, D)   -- normalized*sqrt(1/tau) sample rows  (k tile)
    sq_ref   : VMEM (1, Tq, D)   -- normalized*sqrt(1/tau) sample rows at the q tile
    out_ref  : VMEM (1, Tq, 1)   -- per-row loss contribution of this pair
    m/l1/l2  : VMEM (Tq, 1)      -- running max / head-1 sum / head-2 sum
    """
    p = pl.program_id(1)
    k = pl.program_id(2)
    nk = pl.num_programs(2)

    ratio = scal_ref[p, 0]   # tau_head1 / tau_head2  (head2 logits = head1 logits * ratio)
    w2 = scal_ref[p, 1]      # weight of head 2 (0 -> head 2 disabled)

    @pl.when(k == 0)
    def _init():
        m_sc[...] = jnp.full_like(m_sc, _NEG_LARGE)
        l1_sc[...] = jnp.zeros_like(l1_sc)
        l2_sc[...] = jnp.zeros_like(l2_sc)

    # sim / tau1 for this (q, k) tile -- MXU matmul, f32 accumulation.  1/tau is
    # already folded into both operands by the normalize pass (no per-step scale/cast).
    logits = jax.lax.dot_general(
        a_ref[0], s_ref[0],
        dimension_numbers=(((1,), (1,)), ((), ())),
        preferred_element_type=jnp.float32)                 # (Tq, Tk)

    m_prev = m_sc[...]
    m_new = jnp.maximum(m_prev, jnp.max(logits, axis=-1, keepdims=True))
    shifted = logits - m_new
    l1_sc[...] = (jnp.exp(m_prev - m_new) * l1_sc[...]
                  + jnp.sum(jnp.exp(shifted), axis=-1, keepdims=True))
    m_sc[...] = m_new

    @pl.when(w2 > 0.0)
    def _head2():
        l2_sc[...] = (jnp.exp((m_prev - m_new) * ratio) * l2_sc[...]
                      + jnp.sum(jnp.exp(shifted * ratio), axis=-1, keepdims=True))

    @pl.when(k == nk - 1)
    def _finalize():
        # Positive term sim[i,i]/tau1 via a rowwise dot (no diagonal iota/mask).
        pos = jnp.sum(a_ref[0].astype(jnp.float32) * sq_ref[0].astype(jnp.float32),
                      axis=-1, keepdims=True)
        m = m_sc[...]
        l1 = l1_sc[...]
        l2 = l2_sc[...]
        if n_pad_cols > 0:
            # Padded sample rows are exactly zero -> each padded column contributed
            # exp(0 - m) (resp. exp(-m*ratio)) to the online sums.  Exact correction.
            l1 = l1 - n_pad_cols * jnp.exp(-m)
            l2 = l2 - n_pad_cols * jnp.exp(-m * ratio)
        lse1 = m + jnp.log(jnp.maximum(l1, 1e-30))
        lse2 = m * ratio + jnp.log(jnp.maximum(l2, 1e-30))
        out_ref[0] = (lse1 - pos) + w2 * (lse2 - pos * ratio)


def _run_losses(xn, pair_idx, pair_scal, n_valid, tile_q, tile_k):
    g, npad, d = xn.shape
    p_pairs = pair_idx.shape[0]
    nq = npad // tile_q
    nk = npad // tile_k

    kernel = functools.partial(_loss_kernel, n_pad_cols=npad - n_valid)

    grid_spec = pltpu.PrefetchScalarGridSpec(
        num_scalar_prefetch=2,
        grid=(nq, p_pairs, nk),
        in_specs=[
            # anchor rows of this pair, q tile
            pl.BlockSpec((1, tile_q, d), lambda q, p, k, idx, scal: (idx[p, 0], q, 0)),
            # sample rows of this pair, k tile (the main HBM stream)
            pl.BlockSpec((1, tile_k, d), lambda q, p, k, idx, scal: (idx[p, 1], k, 0)),
            # sample rows of this pair at the q tile (for the diagonal/positive term)
            pl.BlockSpec((1, tile_q, d), lambda q, p, k, idx, scal: (idx[p, 1], q, 0)),
        ],
        out_specs=pl.BlockSpec((1, tile_q, 1), lambda q, p, k, idx, scal: (p, q, 0)),
        scratch_shapes=[
            pltpu.VMEM((tile_q, 1), jnp.float32),   # running max (logits already /tau1)
            pltpu.VMEM((tile_q, 1), jnp.float32),   # head-1 running sum
            pltpu.VMEM((tile_q, 1), jnp.float32),   # head-2 running sum
        ],
    )
    return pl.pallas_call(
        kernel,
        grid_spec=grid_spec,
        out_shape=jax.ShapeDtypeStruct((p_pairs, npad, 1), jnp.float32),
        compiler_params=pltpu.CompilerParams(
            # q axis first + pair axis "arbitrary": v7x megacore shards the uniform
            # q axis instead of the imbalanced 4-pair axis.  k is the reduction.
            dimension_semantics=("parallel", "arbitrary", "arbitrary")),
    )(pair_idx, pair_scal, xn, xn, xn)


# --------------------------------------------------------------------------- #
# Tiling: minimize padding waste; large anchor tile, bounded sample tile
# --------------------------------------------------------------------------- #
def _round_up(n, m):
    return ((n + m - 1) // m) * m


def _choose_tiles(n):
    """Return (npad, tile_q, tile_k)."""
    if n <= 512:
        npad = _round_up(n, 8)
        return npad, npad, npad           # single tile: sample matrix streamed once
    # sample (k) tile from {256, 128}, picking the least padding (prefer 256 on ties)
    best = None
    for tk in (256, 128):
        cand = _round_up(n, tk)
        if best is None or cand < best[0]:
            best = (cand, tk)
    npad, tile_k = best
    # anchor (q) tile: largest multiple of 128 dividing npad, capped at 512
    tile_q = tile_k
    for cand in (512, 384, 256, 128):
        if npad % cand == 0:
            tile_q = cand
            break
    return npad, tile_q, tile_k


# --------------------------------------------------------------------------- #
# Forward pass
# --------------------------------------------------------------------------- #
@functools.partial(jax.jit,
                   static_argnames=("beta", "tau", "tau_intra", "use_bf16_matmul"))
def multi_view_contrast(h1_pred, h2_pred, h1_target, h2_target, *,
                        beta=0.5, tau=0.2, tau_intra=0.4,
                        use_bf16_matmul=False):
    """Forward pass of MultiViewContrast (mode='L2L', SameScaleSampler, InfoNCE)."""
    n, _ = h1_pred.shape
    npad, tile_q, tile_k = _choose_tiles(n)

    # Stack the 4 distinct matrices ONCE; pairs select via scalar-prefetch indices.
    x = jnp.stack([h1_pred, h2_pred, h1_target, h2_target]).astype(jnp.float32)
    if npad != n:
        x = jnp.pad(x, ((0, 0), (0, npad - n), (0, 0)))

    mx_dtype = jnp.bfloat16 if use_bf16_matmul else jnp.float32
    # sqrt(1/tau) is folded into BOTH operands -> logits come out already / tau.
    scale = float(1.0 / tau) ** 0.5
    xn = _run_normalize(x, tile_q, scale, mx_dtype)

    # (anchor matrix, sample matrix) per pair.
    pair_idx = jnp.array([[0, 3],    # h1_pred . h2_target^T  (cross-network 1)
                          [1, 2],    # h2_pred . h1_target^T  (cross-network 2)
                          [0, 1],    # h1_pred . h2_pred^T    (inter 1 + 2 * intra)
                          [1, 0]],   # h2_pred . h1_pred^T    (inter 2)
                         dtype=jnp.int32)
    # (tau_head1/tau_head2, weight of head 2)
    pair_scal = jnp.array([[1.0, 0.0],
                           [1.0, 0.0],
                           [tau / tau_intra, 2.0],
                           [1.0, 0.0]], dtype=jnp.float32)

    rows = _run_losses(xn, pair_idx, pair_scal, n, tile_q, tile_k)[:, :n, 0]  # (4, N)
    per_pair = jnp.mean(rows, axis=1)                                          # (4,)

    cross_network_loss = 0.5 * (per_pair[0] + per_pair[1])
    cross_view_loss = 0.5 * (per_pair[2] + per_pair[3])   # p2 already holds inter1 + 2*intra
    return beta * cross_view_loss + (1.0 - beta) * cross_network_loss


# --------------------------------------------------------------------------- #
# Pure-JAX reference (matches the PyTorch/GCL semantics)
# --------------------------------------------------------------------------- #
def _reference(h1_pred, h2_pred, h1_target, h2_target, beta, tau, tau_intra):
    def infonce(a, s, t):
        an = a / jnp.maximum(jnp.linalg.norm(a, axis=-1, keepdims=True), 1e-12)
        sn = s / jnp.maximum(jnp.linalg.norm(s, axis=-1, keepdims=True), 1e-12)
        sim = an @ sn.T / t
        lse = jax.scipy.special.logsumexp(sim, axis=1)
        return jnp.mean(lse - jnp.diag(sim))

    l_cn = 0.5 * (infonce(h1_pred, h2_target, tau) + infonce(h2_pred, h1_target, tau))
    l_cv = 0.5 * (infonce(h1_pred, h2_pred, tau) + infonce(h2_pred, h1_pred, tau)
                  + infonce(h1_pred, h2_pred, tau_intra)
                  + infonce(h1_pred, h2_pred, tau_intra))
    return beta * l_cv + (1.0 - beta) * l_cn


if __name__ == "__main__":
    beta, tau, tau_intra = 0.6, 0.2, 0.4   # deterministic hyperparameters

    # --- small shape (single-tile path), f32 MXU operands --------------------
    N, D = 8, 32
    k1, k2, k3, k4 = jax.random.split(jax.random.PRNGKey(0), 4)
    h1_pred = jax.random.normal(k1, (N, D), jnp.float32)
    h2_pred = jax.random.normal(k2, (N, D), jnp.float32)
    h1_target = jax.random.normal(k3, (N, D), jnp.float32)
    h2_target = jax.random.normal(k4, (N, D), jnp.float32)

    out = multi_view_contrast(h1_pred, h2_pred, h1_target, h2_target,
                              beta=beta, tau=tau, tau_intra=tau_intra)
    out = jax.block_until_ready(out)
    ref = _reference(h1_pred, h2_pred, h1_target, h2_target, beta, tau, tau_intra)
    assert jnp.allclose(out, ref, rtol=1e-4, atol=1e-4), (out, ref)

    # --- larger shape: asymmetric tiles (Tq=384, Tk=256), multi k-tile online
    #     LSE, and the closed-form padding correction (N=700 -> Npad=768) -------
    N2, D2 = 700, 64
    k5, k6, k7, k8 = jax.random.split(jax.random.PRNGKey(1), 4)
    g1p = jax.random.normal(k5, (N2, D2), jnp.float32)
    g2p = jax.random.normal(k6, (N2, D2), jnp.float32)
    g1t = jax.random.normal(k7, (N2, D2), jnp.float32)
    g2t = jax.random.normal(k8, (N2, D2), jnp.float32)

    out2 = multi_view_contrast(g1p, g2p, g1t, g2t,
                               beta=beta, tau=tau, tau_intra=tau_intra)
    out2 = jax.block_until_ready(out2)
    ref2 = _reference(g1p, g2p, g1t, g2t, beta, tau, tau_intra)
    assert jnp.allclose(out2, ref2, rtol=1e-4, atol=1e-4), (out2, ref2)

    # --- bf16 stored operands (fast path on all generations), f32 accum/LSE ---
    out3 = multi_view_contrast(g1p, g2p, g1t, g2t,
                               beta=beta, tau=tau, tau_intra=tau_intra,
                               use_bf16_matmul=True)
    out3 = jax.block_until_ready(out3)
    assert jnp.allclose(out3, ref2, rtol=5e-2, atol=5e-2), (out3, ref2)

    print("KERNEL_OK")
</pallas_src>

<mosaic_0001>
module attributes {stable_mosaic.version = 11 : i64} {
  func.func @_normalize_kernel(%arg0: i32, %arg1: i32, %arg2: memref<1x8x32xf32, #tpu.memory_space<vmem>>, %arg3: memref<1x8x32xf32, #tpu.memory_space<vmem>>) attributes {dimension_semantics = [#tpu.dimension_semantics<parallel>, #tpu.dimension_semantics<parallel>], iteration_bounds = array<i64: 4, 1>, scalar_prefetch = 0 : i64, scratch_operands = 0 : i64, tpu.core_type = #tpu.core_type<tc>, window_params = [{transform_indices = @transform_0, window_bounds = array<i64: 1, 8, 32>}, {transform_indices = @transform_1, window_bounds = array<i64: 1, 8, 32>}]} {
    %c0 = arith.constant 0 : index
    %c0_0 = arith.constant 0 : index
    %c0_1 = arith.constant 0 : index
    %0 = vector.load %arg2[%c0, %c0_0, %c0_1] : memref<1x8x32xf32, #tpu.memory_space<vmem>>, vector<1x8x32xf32>
    %1 = vector.shape_cast %0 : vector<1x8x32xf32> to vector<8x32xf32>
    %2 = arith.mulf %1, %1 : vector<8x32xf32>
    %cst = arith.constant dense<0.000000e+00> : vector<8xf32>
    %3 = vector.multi_reduction <add>, %2, %cst [1] : vector<8x32xf32> to vector<8xf32>
    %4 = vector.shape_cast %3 : vector<8xf32> to vector<8x1xf32>
    %cst_2 = arith.constant 1.000000e-24 : f32
    %5 = vector.broadcast %cst_2 : f32 to vector<8x1xf32>
    %6 = arith.maximumf %4, %5 : vector<8x1xf32>
    %7 = math.rsqrt %6 : vector<8x1xf32>
    %cst_3 = arith.constant 2.23606801 : f32
    %8 = vector.broadcast %cst_3 : f32 to vector<8x1xf32>
    %9 = arith.mulf %7, %8 : vector<8x1xf32>
    %10 = vector.broadcast %9 : vector<8x1xf32> to vector<8x32xf32>
    %11 = arith.mulf %1, %10 : vector<8x32xf32>
    %c0_4 = arith.constant 0 : index
    %c0_5 = arith.constant 0 : index
    %c0_6 = arith.constant 0 : index
    %12 = vector.load %arg3[%c0_4, %c0_5, %c0_6] : memref<1x8x32xf32, #tpu.memory_space<vmem>>, vector<1x8x32xf32>
    %13 = vector.shape_cast %12 : vector<1x8x32xf32> to vector<8x32xf32>
    %14 = vector.shape_cast %11 : vector<8x32xf32> to vector<1x8x32xf32>
    tpu.vector_store %arg3[%c0_4, %c0_5, %c0_6], %14 {strides = array<i32>} : memref<1x8x32xf32, #tpu.memory_space<vmem>>, vector<1x8x32xf32>,
    return
  }
  func.func @transform_0(%arg0: i32, %arg1: i32) -> (i32, i32, i32) {
    %c0_i32 = arith.constant 0 : i32
    %c0_i32_0 = arith.constant 0 : i32
    return %arg0, %arg1, %c0_i32 : i32, i32, i32
  }
  func.func @transform_1(%arg0: i32, %arg1: i32) -> (i32, i32, i32) {
    %c0_i32 = arith.constant 0 : i32
    %c0_i32_0 = arith.constant 0 : i32
    return %arg0, %arg1, %c0_i32 : i32, i32, i32
  }
}

module attributes {stable_mosaic.version = 11 : i64} {
  func.func @_loss_kernel(%arg0: i32, %arg1: i32, %arg2: i32, %arg3: memref<4x2xi32, #tpu.memory_space<smem>>, %arg4: memref<4x2xf32, #tpu.memory_space<smem>>, %arg5: memref<1x8x32xf32, #tpu.memory_space<vmem>>, %arg6: memref<1x8x32xf32, #tpu.memory_space<vmem>>, %arg7: memref<1x8x32xf32, #tpu.memory_space<vmem>>, %arg8: memref<1x8x1xf32, #tpu.memory_space<vmem>>, %arg9: memref<8x1xf32, #tpu.memory_space<vmem>>, %arg10: memref<8x1xf32, #tpu.memory_space<vmem>>, %arg11: memref<8x1xf32, #tpu.memory_space<vmem>>) attributes {dimension_semantics = [#tpu.dimension_semantics<parallel>, #tpu.dimension_semantics<arbitrary>, #tpu.dimension_semantics<arbitrary>], iteration_bounds = array<i64: 1, 4, 1>, scalar_prefetch = 2 : i64, scratch_operands = 3 : i64, tpu.core_type = #tpu.core_type<tc>, window_params = [{transform_indices = @transform_0, window_bounds = array<i64: 1, 8, 32>}, {transform_indices = @transform_1, window_bounds = array<i64: 1, 8, 32>}, {transform_indices = @transform_2, window_bounds = array<i64: 1, 8, 32>}, {transform_indices = @transform_3, window_bounds = array<i64: 1, 8, 1>}]} {
    %0 = arith.index_cast %arg1 : i32 to index
    %c0 = arith.constant 0 : index
    %1 = memref.load %arg4[%0, %c0] : memref<4x2xf32, #tpu.memory_space<smem>>
    %2 = arith.index_cast %arg1 : i32 to index
    %c1 = arith.constant 1 : index
    %3 = memref.load %arg4[%2, %c1] : memref<4x2xf32, #tpu.memory_space<smem>>
    %c0_i32 = arith.constant 0 : i32
    %4 = arith.cmpi eq, %arg2, %c0_i32 : i32
    %5 = arith.extui %4 : i1 to i32
    %c0_i32_0 = arith.constant 0 : i32
    %6 = arith.cmpi ne, %5, %c0_i32_0 : i32
    scf.if %6 {
      %cst_21 = arith.constant -1.000000e+30 : f32
      %34 = vector.broadcast %cst_21 : f32 to vector<8x1xf32>
      %c0_22 = arith.constant 0 : index
      %c0_23 = arith.constant 0 : index
      %35 = vector.load %arg9[%c0_22, %c0_23] : memref<8x1xf32, #tpu.memory_space<vmem>>, vector<8x1xf32>
      tpu.vector_store %arg9[%c0_22, %c0_23], %34 {strides = array<i32>} : memref<8x1xf32, #tpu.memory_space<vmem>>, vector<8x1xf32>,
      %cst_24 = arith.constant 0.000000e+00 : f32
      %36 = vector.broadcast %cst_24 : f32 to vector<8x1xf32>
      %c0_25 = arith.constant 0 : index
      %c0_26 = arith.constant 0 : index
      %37 = vector.load %arg10[%c0_25, %c0_26] : memref<8x1xf32, #tpu.memory_space<vmem>>, vector<8x1xf32>
      tpu.vector_store %arg10[%c0_25, %c0_26], %36 {strides = array<i32>} : memref<8x1xf32, #tpu.memory_space<vmem>>, vector<8x1xf32>,
      %cst_27 = arith.constant 0.000000e+00 : f32
      %38 = vector.broadcast %cst_27 : f32 to vector<8x1xf32>
      %c0_28 = arith.constant 0 : index
      %c0_29 = arith.constant 0 : index
      %39 = vector.load %arg11[%c0_28, %c0_29] : memref<8x1xf32, #tpu.memory_space<vmem>>, vector<8x1xf32>
      tpu.vector_store %arg11[%c0_28, %c0_29], %38 {strides = array<i32>} : memref<8x1xf32, #tpu.memory_space<vmem>>, vector<8x1xf32>,
    } else {
    }
    %c0_1 = arith.constant 0 : index
    %c0_2 = arith.constant 0 : index
    %c0_3 = arith.constant 0 : index
    %7 = vector.load %arg5[%c0_1, %c0_2, %c0_3] : memref<1x8x32xf32, #tpu.memory_space<vmem>>, vector<1x8x32xf32>
    %8 = vector.shape_cast %7 : vector<1x8x32xf32> to vector<8x32xf32>
    %c0_4 = arith.constant 0 : index
    %c0_5 = arith.constant 0 : index
    %c0_6 = arith.constant 0 : index
    %9 = vector.load %arg6[%c0_4, %c0_5, %c0_6] : memref<1x8x32xf32, #tpu.memory_space<vmem>>, vector<1x8x32xf32>
    %10 = vector.shape_cast %9 : vector<1x8x32xf32> to vector<8x32xf32>
    %cst = arith.constant dense<0.000000e+00> : vector<8x8xf32>
    %11 = tpu.matmul %8, %10, %cst {dimension_numbers = #tpu.dot_dimension_numbers<[1], [1], [0], [0], [0, 0, 1, 0], [], []>} : vector<8x32xf32>, vector<8x32xf32>, vector<8x8xf32> -> vector<8x8xf32>
    %c0_7 = arith.constant 0 : index
    %c0_8 = arith.constant 0 : index
    %12 = vector.load %arg9[%c0_7, %c0_8] : memref<8x1xf32, #tpu.memory_space<vmem>>, vector<8x1xf32>
    %cst_9 = arith.constant dense<0xFF800000> : vector<8xf32>
    %13 = vector.multi_reduction <maximumf>, %11, %cst_9 [1] : vector<8x8xf32> to vector<8xf32>
    %14 = vector.shape_cast %13 : vector<8xf32> to vector<8x1xf32>
    %15 = arith.maximumf %12, %14 : vector<8x1xf32>
    %16 = vector.broadcast %15 : vector<8x1xf32> to vector<8x8xf32>
    %17 = arith.subf %11, %16 : vector<8x8xf32>
    %18 = arith.subf %12, %15 : vector<8x1xf32>
    %19 = math.exp %18 : vector<8x1xf32>
    %c0_10 = arith.constant 0 : index
    %c0_11 = arith.constant 0 : index
    %20 = vector.load %arg10[%c0_10, %c0_11] : memref<8x1xf32, #tpu.memory_space<vmem>>, vector<8x1xf32>
    %21 = arith.mulf %19, %20 : vector<8x1xf32>
    %22 = math.exp %17 : vector<8x8xf32>
    %cst_12 = arith.constant dense<0.000000e+00> : vector<8xf32>
    %23 = vector.multi_reduction <add>, %22, %cst_12 [1] : vector<8x8xf32> to vector<8xf32>
    %24 = vector.shape_cast %23 : vector<8xf32> to vector<8x1xf32>
    %25 = arith.addf %21, %24 : vector<8x1xf32>
    %c0_13 = arith.constant 0 : index
    %c0_14 = arith.constant 0 : index
    %26 = vector.load %arg10[%c0_13, %c0_14] : memref<8x1xf32, #tpu.memory_space<vmem>>, vector<8x1xf32>
    tpu.vector_store %arg10[%c0_13, %c0_14], %25 {strides = array<i32>} : memref<8x1xf32, #tpu.memory_space<vmem>>, vector<8x1xf32>,
    %c0_15 = arith.constant 0 : index
    %c0_16 = arith.constant 0 : index
    %27 = vector.load %arg9[%c0_15, %c0_16] : memref<8x1xf32, #tpu.memory_space<vmem>>, vector<8x1xf32>
    tpu.vector_store %arg9[%c0_15, %c0_16], %15 {strides = array<i32>} : memref<8x1xf32, #tpu.memory_space<vmem>>, vector<8x1xf32>,
    %cst_17 = arith.constant 0.000000e+00 : f32
    %28 = arith.cmpf ogt, %3, %cst_17 : f32
    %29 = arith.extui %28 : i1 to i32
    %c0_i32_18 = arith.constant 0 : i32
    %30 = arith.cmpi ne, %29, %c0_i32_18 : i32
    scf.if %30 {
      %34 = arith.subf %12, %15 : vector<8x1xf32>
      %35 = vector.broadcast %1 : f32 to vector<8x1xf32>
      %36 = arith.mulf %34, %35 : vector<8x1xf32>
      %37 = math.exp %36 : vector<8x1xf32>
      %c0_21 = arith.constant 0 : index
      %c0_22 = arith.constant 0 : index
      %38 = vector.load %arg11[%c0_21, %c0_22] : memref<8x1xf32, #tpu.memory_space<vmem>>, vector<8x1xf32>
      %39 = arith.mulf %37, %38 : vector<8x1xf32>
      %40 = vector.broadcast %1 : f32 to vector<8x8xf32>
      %41 = arith.mulf %17, %40 : vector<8x8xf32>
      %42 = math.exp %41 : vector<8x8xf32>
      %cst_23 = arith.constant dense<0.000000e+00> : vector<8xf32>
      %43 = vector.multi_reduction <add>, %42, %cst_23 [1] : vector<8x8xf32> to vector<8xf32>
      %44 = vector.shape_cast %43 : vector<8xf32> to vector<8x1xf32>
      %45 = arith.addf %39, %44 : vector<8x1xf32>
      %c0_24 = arith.constant 0 : index
      %c0_25 = arith.constant 0 : index
      %46 = vector.load %arg11[%c0_24, %c0_25] : memref<8x1xf32, #tpu.memory_space<vmem>>, vector<8x1xf32>
      tpu.vector_store %arg11[%c0_24, %c0_25], %45 {strides = array<i32>} : memref<8x1xf32, #tpu.memory_space<vmem>>, vector<8x1xf32>,
    } else {
    }
    %c0_i32_19 = arith.constant 0 : i32
    %31 = arith.cmpi eq, %arg2, %c0_i32_19 : i32
    %32 = arith.extui %31 : i1 to i32
    %c0_i32_20 = arith.constant 0 : i32
    %33 = arith.cmpi ne, %32, %c0_i32_20 : i32
    scf.if %33 {
      %c0_21 = arith.constant 0 : index
      %c0_22 = arith.constant 0 : index
      %c0_23 = arith.constant 0 : index
      %34 = vector.load %arg5[%c0_21, %c0_22, %c0_23] : memref<1x8x32xf32, #tpu.memory_space<vmem>>, vector<1x8x32xf32>
      %35 = vector.shape_cast %34 : vector<1x8x32xf32> to vector<8x32xf32>
      %c0_24 = arith.constant 0 : index
      %c0_25 = arith.constant 0 : index
      %c0_26 = arith.constant 0 : index
      %36 = vector.load %arg7[%c0_24, %c0_25, %c0_26] : memref<1x8x32xf32, #tpu.memory_space<vmem>>, vector<1x8x32xf32>
      %37 = vector.shape_cast %36 : vector<1x8x32xf32> to vector<8x32xf32>
      %38 = arith.mulf %35, %37 : vector<8x32xf32>
      %cst_27 = arith.constant dense<0.000000e+00> : vector<8xf32>
      %39 = vector.multi_reduction <add>, %38, %cst_27 [1] : vector<8x32xf32> to vector<8xf32>
      %40 = vector.shape_cast %39 : vector<8xf32> to vector<8x1xf32>
      %c0_28 = arith.constant 0 : index
      %c0_29 = arith.constant 0 : index
      %41 = vector.load %arg9[%c0_28, %c0_29] : memref<8x1xf32, #tpu.memory_space<vmem>>, vector<8x1xf32>
      %c0_30 = arith.constant 0 : index
      %c0_31 = arith.constant 0 : index
      %42 = vector.load %arg10[%c0_30, %c0_31] : memref<8x1xf32, #tpu.memory_space<vmem>>, vector<8x1xf32>
      %c0_32 = arith.constant 0 : index
      %c0_33 = arith.constant 0 : index
      %43 = vector.load %arg11[%c0_32, %c0_33] : memref<8x1xf32, #tpu.memory_space<vmem>>, vector<8x1xf32>
      %cst_34 = arith.constant 1.000000e-30 : f32
      %44 = vector.broadcast %cst_34 : f32 to vector<8x1xf32>
      %45 = arith.maximumf %42, %44 : vector<8x1xf32>
      %46 = math.log %45 : vector<8x1xf32>
      %47 = arith.addf %41, %46 : vector<8x1xf32>
      %48 = vector.broadcast %1 : f32 to vector<8x1xf32>
      %49 = arith.mulf %41, %48 : vector<8x1xf32>
      %cst_35 = arith.constant 1.000000e-30 : f32
      %50 = vector.broadcast %cst_35 : f32 to vector<8x1xf32>
      %51 = arith.maximumf %43, %50 : vector<8x1xf32>
      %52 = math.log %51 : vector<8x1xf32>
      %53 = arith.addf %49, %52 : vector<8x1xf32>
      %54 = arith.subf %47, %40 : vector<8x1xf32>
      %55 = vector.broadcast %1 : f32 to vector<8x1xf32>
      %56 = arith.mulf %40, %55 : vector<8x1xf32>
      %57 = arith.subf %53, %56 : vector<8x1xf32>
      %58 = vector.broadcast %3 : f32 to vector<8x1xf32>
      %59 = arith.mulf %58, %57 : vector<8x1xf32>
      %60 = arith.addf %54, %59 : vector<8x1xf32>
      %c0_36 = arith.constant 0 : index
      %c0_37 = arith.constant 0 : index
      %c0_38 = arith.constant 0 : index
      %61 = vector.load %arg8[%c0_36, %c0_37, %c0_38] : memref<1x8x1xf32, #tpu.memory_space<vmem>>, vector<1x8x1xf32>
      %62 = vector.shape_cast %61 : vector<1x8x1xf32> to vector<8x1xf32>
      %63 = vector.shape_cast %60 : vector<8x1xf32> to vector<1x8x1xf32>
      tpu.vector_store %arg8[%c0_36, %c0_37, %c0_38], %63 {strides = array<i32>} : memref<1x8x1xf32, #tpu.memory_space<vmem>>, vector<1x8x1xf32>,
    } else {
    }
    return
  }
  func.func @transform_0(%arg0: i32, %arg1: i32, %arg2: i32, %arg3: memref<4x2xi32, #tpu.memory_space<smem>>, %arg4: memref<4x2xf32, #tpu.memory_space<smem>>) -> (i32, i32, i32) {
    %0 = arith.index_cast %arg1 : i32 to index
    %c0 = arith.constant 0 : index
    %1 = memref.load %arg3[%0, %c0] : memref<4x2xi32, #tpu.memory_space<smem>>
    %c0_i32 = arith.constant 0 : i32
    %c0_i32_0 = arith.constant 0 : i32
    return %1, %arg0, %c0_i32 : i32, i32, i32
  }
  func.func @transform_1(%arg0: i32, %arg1: i32, %arg2: i32, %arg3: memref<4x2xi32, #tpu.memory_space<smem>>, %arg4: memref<4x2xf32, #tpu.memory_space<smem>>) -> (i32, i32, i32) {
    %0 = arith.index_cast %arg1 : i32 to index
    %c1 = arith.constant 1 : index
    %1 = memref.load %arg3[%0, %c1] : memref<4x2xi32, #tpu.memory_space<smem>>
    %c0_i32 = arith.constant 0 : i32
    %c0_i32_0 = arith.constant 0 : i32
    return %1, %arg2, %c0_i32 : i32, i32, i32
  }
  func.func @transform_2(%arg0: i32, %arg1: i32, %arg2: i32, %arg3: memref<4x2xi32, #tpu.memory_space<smem>>, %arg4: memref<4x2xf32, #tpu.memory_space<smem>>) -> (i32, i32, i32) {
    %0 = arith.index_cast %arg1 : i32 to index
    %c1 = arith.constant 1 : index
    %1 = memref.load %arg3[%0, %c1] : memref<4x2xi32, #tpu.memory_space<smem>>
    %c0_i32 = arith.constant 0 : i32
    %c0_i32_0 = arith.constant 0 : i32
    return %1, %arg0, %c0_i32 : i32, i32, i32
  }
  func.func @transform_3(%arg0: i32, %arg1: i32, %arg2: i32, %arg3: memref<4x2xi32, #tpu.memory_space<smem>>, %arg4: memref<4x2xf32, #tpu.memory_space<smem>>) -> (i32, i32, i32) {
    %c0_i32 = arith.constant 0 : i32
    %c0_i32_0 = arith.constant 0 : i32
    return %arg1, %arg0, %c0_i32 : i32, i32, i32
  }
}

</mosaic_0001>

<bundles_post_ra>
// kernel: multi_view_contrast.2
= control target key start
LH: loop header
LB: loop body
LE: loop exit
PB: predicated region body
PF: predicated region fallthrough
CT: control target
= control target key end

     0   :  { %s297_s6 = smov 0   ;;  %s299_s7 = smov 0   ;;  %s323_s0 = inlined_call_operand.vmem [shape: f32[4,8,32], index: 0, kind: input, shape index: {}]   ;;  %s324_s1 = inlined_call_operand.vmem [shape: f32[4,8,32], index: 1, kind: output, shape index: {}]  }
   0x1   :  { %s301_s8 = smov 0  }
   0x2 LB: > { %s23_s9 = sadd.s32 1, %s281_s7  ;;  %p232_p0 = scmp.ge.s32.totalorder %s285_s8, 1  ;;  %s285_s8 = sphi %s301_s8, %s11_s8   ;;  %s281_s7 = sphi %s299_s7, %s326_s7   ;;  %s277_s6 = sphi %s297_s6, %s325_s6  }
   0x3   : > { %p25_p1 = scmp.ge.s32.totalorder %s23_s9, 4  ;;  %p105_p2 = scmp.lt.s32.totalorder %s285_s8, 5 }
   0x5   : > { %s328_s9 = smov (%p25_p1, %s23_s9), 0  ;;  %p106_p3 = pnand %p232_p0, %p105_p2 }
   0x6   : > { %p129_p4 = scmp.lt.s32.totalorder (!%p106_p3), %s277_s6, 3  ;;  %vm145_vm0 = vcmask (!%p106_p3), 261120  }
   0x7   : > { %109 = sbr.rel (%p106_p3) target bundleno = 181 (0xb5), region = 24 }
   0xe   : > { %s330_s6 = smov (!%p129_p4, %s277_s6), 3 }
   0xf   : > { %s233_s10 = sshll.u32 %s330_s6, 3 }
  0x10   : > { %s135_s13 = scalar_lea.vmem %s323_s0, %s233_s10  ;;  %s142_s16 = scalar_lea.vmem %s324_s1, %s233_s10 }
  0x11   : > { %v143_v0 = vld [vmem:[%s135_s13] sm:$0xff] }
  0x12   : > { %v144_v1 = vmul.f32 %v143_v0, %v143_v0 }
  0x14   : > { %v146_v2 = vsel %vm145_vm0, %v144_v1, 0.0 }
  0x15   : > { %147 = vadd.xlane.f32.xlu0 %v146_v2 }
  0xa2   : > { %v148_v3 = vpop.xlane.xlu0 %147 }
  0xa3   : > { %v149_v4 = vmax.f32 %v148_v3, 1e-24 }
  0xa5   : > { %261 = vrsqrt.f32 %v149_v4 }
  0xaf   : > { %v262_v5 = vpop.eup %261 }
  0xb0   : > { %v151_v6 = vmul.f32 2.236068, %v262_v5 }
  0xb2   : > { %v152_v7 = vmul.f32 %v151_v6, %v143_v0 }
  0xb4   : > { %153 = vst.msk [vmem:[%s142_s16] sm:$0xff] %vm145_vm0, %v152_v7 }
  0xb5 PF: > { %s11_s8 = sadd.s32 1, %s285_s8   ;;  %s325_s6 = smov %s281_s7 }
  0xb6   : > { %p8_p5 = scmp.ge.s32.totalorder %s11_s8, 6   ;;  %s326_s7 = smov %s328_s9 }
  0xb8   :  { %10 = sbr.rel (!%p8_p5) target bundleno = 2 (0x2), region = 54 }

// kernel: multi_view_contrast.3
= control target key start
LH: loop header
LB: loop body
LE: loop exit
PB: predicated region body
PF: predicated region fallthrough
CT: control target
= control target key end

     0   :  { %s836_s0 = inlined_call_operand.vmem [shape: s32[4,2], index: 0, kind: input, shape index: {}]   ;;  %s837_s2 = inlined_call_operand.vmem [shape: f32[4,8,32], index: 2, kind: input, shape index: {}, may-alias: {2,3,4}]   ;;  %s838_s3 = inlined_call_operand.vmem [shape: f32[4,8,32], index: 3, kind: input, shape index: {}, may-alias: {2,3,4}]   ;;  %s839_s4 = inlined_call_operand.vmem [shape: f32[4,8,32], index: 4, kind: input, shape index: {}, may-alias: {2,3,4}]   ;;  %s840_s5 = inlined_call_operand.vmem [shape: f32[4,8,1], index: 5, kind: output, shape index: {}]   ;;  %s841_s1 = inlined_call_operand.vmem [shape: f32[4,2], index: 1, kind: input, shape index: {}]  }
   0x1   :  { %s10_s20 = sshll.u32 %s836_s0, 4  ;;  %s14_s23 = sshll.u32 %s841_s1, 4  ;;  %s11_s20 = int_to_ptr.vmem [resolvable:$true] %s10_s20  ;;  %s15_s23 = int_to_ptr.vmem [resolvable:$true] %s14_s23 }
   0x2   :  { %s672_s24 = scalar_lea.vmem %s11_s20, 64  ;;  %p677_p1 = scmp.lt.s32.totalorder %s11_s20, %s11_s20 }
   0x3   :  { %p673_p0 = scmp.ne.s32.totalorder %s11_s20, %s672_s24  ;;  %p678_p2 = scmp.lt.s32.totalorder %s672_s24, %s672_s24 }
   0x5   :  { %p679_p3 = por %p678_p2, %p677_p1 }
   0x7   :  { %p680_p4 = pnand %p679_p3, %p673_p0 }
   0x9   :  { %683 = shalt.err (!%p680_p4)  }
   0xa   :  { %s722_s25 = smov [#allocation6]   ;;  %s684_s26 = scalar_lea.vmem %s15_s23, 64 }
   0xb   :  { %13 = dma.vmem_to_smem %s11_s20, 64, %s722_s25, [#allocation5] }
   0xc   :  { %p685_p5 = scmp.ne.s32.totalorder %s15_s23, %s684_s26  ;;  %p689_p6 = scmp.lt.s32.totalorder %s15_s23, %s15_s23 }
   0xd   :  { %p690_p7 = scmp.lt.s32.totalorder %s684_s26, %s684_s26 }
   0xf   :  { %p691_p8 = por %p690_p7, %p689_p6 }
  0x11   :  { %p692_p9 = pnand %p691_p8, %p685_p5 }
  0x13   :  { %695 = shalt.err (!%p692_p9)  }
  0x14   :  { %s723_s0 = smov [#allocation7]  }
  0x15   :  { %17 = dma.vmem_to_smem %s15_s23, 64, %s723_s0, [#allocation5] }
  0x16   :  { %708 = dma.done.wait [#allocation5], 128 }
  0x17   :  { %709 = vsyncadd [#allocation5], 4294967168 }
  0x18   :  { %19 = sfence }
  0x19   :  { %s764_s1 = smov 0   ;;  %s766_s27 = smov 0  }
  0x1a   :  { %s768_s28 = smov 0  }
  0x1b LB: > { %s40_s29 = sadd.s32 1, %s716_s27  ;;  %p609_p10 = scmp.ge.s32.totalorder %s720_s28, 1  ;;  %s720_s28 = sphi %s768_s28, %s25_s28   ;;  %s716_s27 = sphi %s766_s27, %s843_s27   ;;  %s712_s1 = sphi %s764_s1, %s842_s1  }
  0x1c   : > { %p42_p11 = scmp.ge.s32.totalorder %s40_s29, 4  ;;  %p234_p12 = scmp.lt.s32.totalorder %s720_s28, 5 }
  0x1e   : > { %s845_s29 = smov (%p42_p11, %s40_s29), 0  ;;  %p235_p13 = pnand %p609_p10, %p234_p12 }
  0x1f   : > { %p321_p0 = scmp.lt.s32.totalorder (!%p235_p13), %s712_s1, 3  ;;  %vm336_vm0 = vcmask (!%p235_p13), 7168   ;;  %s610_s30 = sshll.u32 (!%p235_p13), %s712_s1, 7  ;;  %v724_v0 = vmov (!%p235_p13), 0.0   ;;  %vm725_vm1 = vmmov (!%p235_p13), 0   ;;  %vm342_vm2 = vcmask (!%p235_p13), 261120  }
  0x20   : > { %238 = sbr.rel (%p235_p13) target bundleno = 854 (0x356), region = 32  ;;  %338 = vst.msk [vmem:[#allocation3] sm:$0xff] (!%p235_p13), %vm336_vm0, %v724_v0  ;;  %339 = vst.msk [vmem:[#allocation4] sm:$0xff] (!%p235_p13), %vm336_vm0, %v724_v0  ;;  %624 = vmatprep.subr.mxu0 (!%p235_p13), %v724_v0  ;;  %s296_s6 = sadd.s32 (!%p235_p13), 1, %s610_s30  ;;  %626 = vmatprep.mubr.msk.f32.mxu0 (!%p235_p13), %vm725_vm1, %v724_v0  ;;  %v726_v3 = vmov (!%p235_p13), -1e+30  }
  0x21   : > { %s784_s7 = sld [smem:[#allocation7 + %s610_s30]] (!%p235_p13)  ;;  %337 = vst.msk [vmem:[#allocation2] sm:$0xff] (!%p235_p13), %vm336_vm0, %v726_v3  ;;  %vm420_vm3 = vcmask (!%p235_p13), 64512   ;;  %v727_v7 = vmov (!%p235_p13), 0  }
  0x22   : > { %s297_s8 = sld [smem:[#allocation6 + %s296_s6]] (!%p235_p13)  ;;  %659 = vset.pattern.permute.xlu0 (!%p235_p13), %v727_v7 }
  0x23   : > { %s310_s9 = sld [smem:[#allocation6 + %s296_s6]] (!%p235_p13) }
  0x24   : > { %s786_s11 = sld [smem:[#allocation7 + %s296_s6]] (!%p235_p13) }
  0x25   : > { %s285_s15 = sld [smem:[#allocation6 + %s610_s30]] (!%p235_p13) }
  0x27   : > { %s847_s1 = smov (!%p321_p0, %s712_s1), 3  ;;  %v434_v19 = vld [vmem:[#allocation3] sm:$0xff] }
  0x28   : > { %s616_s10 = sshll.u32 %s847_s1, 3  ;;  %p298_p1 = scmp.lt.s32.totalorder %s297_s8, 3  ;;  %v419_v8 = vld [vmem:[#allocation2] sm:$0xff] }
  0x29   : > { %s791_s14 = scalar_lea.vmem %s840_s5, %s616_s10  ;;  %p311_p2 = scmp.lt.s32.totalorder %s310_s9, 3 }
  0x2a   : > { %p445_p3 = scmp.gt.f32.partialorder %s786_s11, 0.0  ;;  %s849_s8 = smov (!%p298_p1, %s297_s8), 3 }
  0x2b   : > { %s851_s9 = smov (!%p311_p2, %s310_s9), 3  ;;  %s613_s16 = sshll.u32 %s849_s8, 3  ;;  %v449_v23 = vstv (%p445_p3), %s784_s7  ;;  %v453_v31 = vld [vmem:[#allocation4] sm:$0xff] (%p445_p3) }
  0x2c   : > { %p286_p4 = scmp.lt.s32.totalorder %s285_s15, 3  ;;  %s304_s19 = scalar_lea.vmem %s838_s3, %s613_s16 }
  0x2d   : > { %s615_s20 = sshll.u32 %s851_s9, 3  ;;  %v341_v1 = vld [vmem:[%s304_s19] sm:$0xff] }
  0x2e   : > { %s800_s23 = scalar_lea.vmem %s839_s4, %s615_s20  ;;  %625 = vmatpush3.xpose.msk.msra.mxu0 %vm342_vm2, %v341_v1  ;;  %s853_s15 = smov (!%p286_p4, %s285_s15), 3 }
  0x2f   : > { %s611_s24 = sshll.u32 %s853_s15, 3 }
  0x30   : > { %s806_s0 = scalar_lea.vmem %s837_s2, %s611_s24 }
  0x31   : > { %v340_v2 = vld [vmem:[%s806_s0] sm:$0xff] }
  0x32   : > { %627 = vmatmul.mubr.msk.f32.vlgmr.msra.gmra.mrb[0].mxu0 %vm342_vm2, %v340_v2 }
 0x105   : > { %v415_v4 = vpop.f32.mrb[0].mxu0 }
 0x106   : > { %v628_v5 = vpop.f32.mrb[1].mxu0  ;;  %v421_v6 = vsel %vm420_vm3, %v415_v4, -inf }
 0x107   : > { %422 = vmax.xlane.f32.xlu0 %v421_v6 }
 0x194   : > { %v423_v9 = vpop.xlane.xlu0 %422 }
 0x195   : > { %v424_v10 = vmax.f32 %v419_v8, %v423_v9 }
 0x197   : > { %v431_v11 = vsub.f32 %v419_v8, %v424_v10  ;;  %444 = vst.msk [vmem:[#allocation2] sm:$0xff] %vm336_vm0, %v424_v10  ;;  %427 = vperm.xlu0 %659, %v424_v10  }
 0x199   : > { %v432_v17 = vmul.f32 1.442695, %v431_v11  ;;  %v450_v28 = vmul.f32 (%p445_p3), %v449_v23, %v431_v11 }
 0x19b   : > { %v451_v29 = vmul.f32 (%p445_p3), 1.442695, %v450_v28 }
 0x216   : > { %v428_v12 = vpop.permute.xlu0 %427 }
 0x217   : > { %v430_v13 = vsub.f32 %v415_v4, %v428_v12 }
 0x219   : > { %v436_v14 = vmul.f32 1.442695, %v430_v13  ;;  %v455_v24 = vmul.f32 (%p445_p3), %v449_v23, %v430_v13 }
 0x21b   : > { %660 = vpow2.f32 %v436_v14  ;;  %v456_v25 = vmul.f32 (%p445_p3), 1.442695, %v455_v24 }
 0x21c   : > { %662 = vpow2.f32 %v432_v17 }
 0x21d   : > { %664 = vpow2.f32 (%p445_p3), %v456_v25 }
 0x21e   : > { %666 = vpow2.f32 (%p445_p3), %v451_v29 }
 0x225   : > { %v661_v15 = vpop.eup %660 }
 0x226   : > { %v438_v16 = vsel %vm420_vm3, %v661_v15, 0.0  ;;  %v663_v18 = vpop.eup %662 }
 0x227   : > { %439 = vadd.xlane.f32.xlu1 %v438_v16  ;;  %v435_v20 = vmul.f32 %v663_v18, %v434_v19  ;;  %v665_v26 = vpop.eup (%p445_p3), %664 }
 0x228   : > { %v458_v27 = vsel (%p445_p3), %vm420_vm3, %v665_v26, 0.0  ;;  %v667_v30 = vpop.eup (%p445_p3), %666 }
 0x229   : > { %459 = vadd.xlane.f32.xlu0 (%p445_p3), %v458_v27  ;;  %v454_v32 = vmul.f32 (%p445_p3), %v667_v30, %v453_v31 }
 0x2b1   : > { %448 = sbr.rel (!%p445_p3) target bundleno = 698 (0x2ba), region = 40 }
 0x2b4   : > { %v440_v21 = vpop.xlane.xlu1 %439 }
 0x2b5   : > { %v441_v22 = vadd.f32 %v440_v21, %v435_v20 }
 0x2b6   : > { %v460_v33 = vpop.xlane.xlu0 (%p445_p3), %459 }
 0x2b7   : > { %443 = vst.msk [vmem:[#allocation3] sm:$0xff] %vm336_vm0, %v441_v22  ;;  %v461_v34 = vadd.f32 (%p445_p3), %v460_v33, %v454_v32 }
 0x2b9   : > { %462 = vst.msk [vmem:[#allocation4] sm:$0xff] %vm336_vm0, %v461_v34 }
 0x2ba PF: > { %v466_v35 = vld [vmem:[%s806_s0] sm:$0xff]  ;;  %v479_v45 = vstv %s784_s7  ;;  %v488_v54 = vstv %s786_s11 }
 0x2bb   : > { %v467_v36 = vld [vmem:[%s800_s23] sm:$0xff] }
 0x2bc   : > { %v468_v37 = vmul.f32 %v467_v36, %v466_v35  ;;  %v472_v44 = vld [vmem:[#allocation2] sm:$0xff] }
 0x2bd   : > { %v480_v47 = vmul.f32 %v479_v45, %v472_v44 }
 0x2be   : > { %v469_v38 = vsel %vm342_vm2, %v468_v37, 0.0 }
 0x2bf   : > { %470 = vadd.xlane.f32.xlu0 %v469_v38 }
 0x2c0   : > { %v474_v39 = vld [vmem:[#allocation4] sm:$0xff]  ;;  %v473_v40 = vld [vmem:[#allocation3] sm:$0xff] }
 0x2c1   : > { %v481_v41 = vmax.f32 %v474_v39, 1e-30  ;;  %v475_v42 = vmax.f32 %v473_v40, 1e-30 }
 0x2c3   : > { %668 = vlog2.f32 %v481_v41 }
 0x2c4   : > { %670 = vlog2.f32 %v475_v42 }
 0x2cd   : > { %v669_v43 = vpop.eup %668 }
 0x2ce   : > { %v671_v46 = vpop.eup %670  ;;  %v483_v48 = vmul.f32 0.6931472, %v669_v43 }
 0x2cf   : > { %v477_v49 = vmul.f32 0.6931472, %v671_v46 }
 0x2d0   : > { %v484_v50 = vadd.f32 %v483_v48, %v480_v47 }
 0x2d1   : > { %v478_v52 = vadd.f32 %v477_v49, %v472_v44 }
 0x34c   : > { %v471_v51 = vpop.xlane.xlu0 %470 }
 0x34d   : > { %v486_v53 = vmul.f32 %v479_v45, %v471_v51  ;;  %v485_v56 = vsub.f32 %v478_v52, %v471_v51 }
 0x34f   : > { %v487_v55 = vsub.f32 %v484_v50, %v486_v53 }
 0x351   : > { %v489_v57 = vmul.f32 %v488_v54, %v487_v55 }
 0x353   : > { %v490_v58 = vadd.f32 %v489_v57, %v485_v56 }
 0x355   : > { %491 = vst.msk [vmem:[%s791_s14] sm:$0xff] %vm336_vm0, %v490_v58 }
 0x356 PF: > { %s25_s28 = sadd.s32 1, %s720_s28   ;;  %s842_s1 = smov %s716_s27 }
 0x357   : > { %p22_p5 = scmp.ge.s32.totalorder %s25_s28, 6   ;;  %s843_s27 = smov %s845_s29 }
 0x359   :  { %24 = sbr.rel (!%p22_p5) target bundleno = 27 (0x1b), region = 80 }

</bundles_post_ra>
